<compile_context>
chip_gen: v5e
topology: v5e:2x2
jax: 0.10.0
libtpu: 0.0.40
codegen_flags: <defaults>
</compile_context>

<pallas_src>
import jax
import jax.numpy as jnp
from jax import lax
from jax.experimental import pallas as pl
from jax.experimental.pallas import tpu as pltpu

NEG_SLOPE = 0.01  # torch.nn.LeakyReLU default negative_slope


def _round_up(a, b):
    return ((a + b - 1) // b) * b


def _sentence_embedding_kernel(x_ref, w_ref, b_ref, m_ref, o_ref):
    # (tm, h_in) x (h_out_pad, h_in) contracted on dim 1 of BOTH operands
    # -> (tm, h_out_pad). Weight is used in its native PyTorch layout, so no
    # wrapper-side transpose (extra HBM read+write) is needed; the MXU handles
    # the transposed operand.
    y = lax.dot_general(
        x_ref[...], w_ref[...],
        dimension_numbers=(((1,), (1,)), ((), ())),
        preferred_element_type=jnp.float32)
    y = y + b_ref[...]                      # bias broadcast over rows (f32)
    y = jnp.where(y > 0, y, NEG_SLOPE * y)  # LeakyReLU in f32
    # Rows NOT listed in mask_nonzero become exactly 0 (x - x = 0, lrelu(0)=0);
    # rows listed keep their value (x - 0 = x). m_ref is a {0,1} column vector
    # broadcast over h_out -- equivalent to the PyTorch scatter+subtract.
    o_ref[...] = (y * m_ref[...]).astype(o_ref.dtype)


def sentence_embedding_forward(x, weight, bias, mask_nonzero, *, tm=512,
                               compute_dtype=None,
                               vmem_budget_bytes=48 * 1024 * 1024):
    """x: (B, S, h_in); weight: (h_out, h_in) [PyTorch layout]; bias: (h_out,);
    mask_nonzero: tuple (batch_idx, row_idx) of int arrays.
    compute_dtype: optionally cast x/weight (e.g. jnp.bfloat16 on v6e/v7x)."""
    B, S, h_in = x.shape
    h_out = weight.shape[0]
    M = B * S
    out_dtype = x.dtype

    if compute_dtype is not None:
        x = x.astype(compute_dtype)
        weight = weight.astype(compute_dtype)

    # --- Lane-dense output: pad h_out to a multiple of 128 (zero rows/bias) ---
    h_out_pad = _round_up(h_out, 128)
    if h_out_pad != h_out:
        weight = jnp.pad(weight, ((0, h_out_pad - h_out), (0, 0)))
        bias = jnp.pad(bias, (0, h_out_pad - h_out))

    # --- Row tile: as large as possible, bounded by rows and VMEM budget ---
    tm_eff = max(8, min(_round_up(tm, 8), _round_up(M, 8)))
    in_itemsize = weight.dtype.itemsize

    def _vmem_bytes(t):
        x_bytes = 2 * t * h_in * in_itemsize          # double-buffered x tile
        o_bytes = 2 * t * h_out_pad * out_dtype.itemsize  # double-buffered out
        w_bytes = 2 * h_out_pad * h_in * in_itemsize  # resident weight (2 bufs)
        b_bytes = 2 * h_out_pad * 4
        m_bytes = 2 * t * 4
        return x_bytes + o_bytes + w_bytes + b_bytes + m_bytes

    while tm_eff > 8 and _vmem_bytes(tm_eff) > 0.6 * vmem_budget_bytes:
        tm_eff = max(8, _round_up(tm_eff // 2, 8))

    M_pad = _round_up(M, tm_eff)

    x2d = x.reshape(M, h_in)
    if M_pad != M:
        x2d = jnp.pad(x2d, ((0, M_pad - M), (0, 0)))
    b2d = bias.reshape(1, h_out_pad).astype(jnp.float32)

    # {0,1} keep mask per row; padded rows stay 0 so their output is 0.
    batch_idx, row_idx = mask_nonzero
    keep = jnp.zeros((B, S), jnp.float32).at[batch_idx, row_idx].set(1.0)
    keep = keep.reshape(M, 1)
    if M_pad != M:
        keep = jnp.pad(keep, ((0, M_pad - M), (0, 0)))

    grid = (M_pad // tm_eff,)

    cost = pl.CostEstimate(
        flops=2 * M_pad * h_in * h_out_pad,
        transcendentals=0,
        bytes_accessed=(M_pad * h_in * in_itemsize
                        + h_out_pad * h_in * in_itemsize
                        + M_pad * h_out_pad * out_dtype.itemsize
                        + M_pad * 4 + h_out_pad * 4))

    out2d = pl.pallas_call(
        _sentence_embedding_kernel,
        out_shape=jax.ShapeDtypeStruct((M_pad, h_out_pad), out_dtype),
        grid_spec=pltpu.PrefetchScalarGridSpec(
            num_scalar_prefetch=0,
            grid=grid,
            in_specs=[
                pl.BlockSpec((tm_eff, h_in), lambda i: (i, 0)),
                # weight kept in (h_out_pad, h_in) layout, resident across grid
                pl.BlockSpec((h_out_pad, h_in), lambda i: (0, 0)),
                pl.BlockSpec((1, h_out_pad), lambda i: (0, 0)),
                # per-row keep mask: (tm, 1) lane-sparse but tiny stream
                pl.BlockSpec((tm_eff, 1), lambda i: (i, 0)),
            ],
            out_specs=pl.BlockSpec((tm_eff, h_out_pad), lambda i: (i, 0)),
        ),
        compiler_params=pltpu.CompilerParams(
            dimension_semantics=("parallel",),
            vmem_limit_bytes=vmem_budget_bytes),
        cost_estimate=cost,
    )(x2d, weight, b2d, keep)

    return out2d[:M, :h_out].reshape(B, S, h_out)


def _reference(x, weight, bias, mask_nonzero):
    """Pure-JAX re-statement of the PyTorch forward for verification."""
    y = jnp.einsum("bsi,oi->bso", x, weight) + bias
    mask_matrix = y
    batch_idx, row_idx = mask_nonzero
    mask_matrix = mask_matrix.at[batch_idx, row_idx, :].set(0.0)
    y = y - mask_matrix
    return jnp.where(y > 0, y, NEG_SLOPE * y)


if __name__ == "__main__":
    key = jax.random.PRNGKey(0)
    B, S, H_IN, H_OUT = 2, 8, 32, 64

    kx, kw, kb = jax.random.split(key, 3)
    x = jax.random.normal(kx, (B, S, H_IN), dtype=jnp.float32)

    # Deterministic nn.Linear-style init: U(-1/sqrt(h_in), 1/sqrt(h_in))
    bound = 1.0 / (H_IN ** 0.5)
    weight = jax.random.uniform(kw, (H_OUT, H_IN), jnp.float32, -bound, bound)
    bias = jax.random.uniform(kb, (H_OUT,), jnp.float32, -bound, bound)

    # mask_nonzero: (batch indices, row indices) of positions that survive
    batch_idx = jnp.array([0, 0, 0, 1, 1], dtype=jnp.int32)
    row_idx = jnp.array([0, 3, 5, 1, 7], dtype=jnp.int32)

    out = sentence_embedding_forward(x, weight, bias, (batch_idx, row_idx))
    out = jax.block_until_ready(out)

    ref = _reference(x, weight, bias, (batch_idx, row_idx))
    assert out.shape == ref.shape, "shape mismatch vs reference"
    assert jnp.allclose(out, ref, atol=1e-5, rtol=1e-5), "mismatch vs reference"

    print("KERNEL_OK")
</pallas_src>

<mosaic_0001>
module attributes {stable_mosaic.version = 11 : i64} {
  func.func @_sentence_embedding_kernel(%arg0: i32, %arg1: memref<16x32xf32, #tpu.memory_space<vmem>>, %arg2: memref<128x32xf32, #tpu.memory_space<vmem>>, %arg3: memref<1x128xf32, #tpu.memory_space<vmem>>, %arg4: memref<16x1xf32, #tpu.memory_space<vmem>>, %arg5: memref<16x128xf32, #tpu.memory_space<vmem>>) attributes {dimension_semantics = [#tpu.dimension_semantics<parallel>], iteration_bounds = array<i64: 1>, scalar_prefetch = 0 : i64, scratch_operands = 0 : i64, tpu.core_type = #tpu.core_type<tc>, window_params = [{transform_indices = @transform_0, window_bounds = array<i64: 16, 32>}, {pipeline_mode = #tpu.pipeline_mode<synchronous>, transform_indices = @transform_1, window_bounds = array<i64: 128, 32>}, {pipeline_mode = #tpu.pipeline_mode<synchronous>, transform_indices = @transform_2, window_bounds = array<i64: 1, 128>}, {transform_indices = @transform_3, window_bounds = array<i64: 16, 1>}, {transform_indices = @transform_4, window_bounds = array<i64: 16, 128>}]} {
    %c0 = arith.constant 0 : index
    %c0_0 = arith.constant 0 : index
    %0 = vector.load %arg1[%c0, %c0_0] : memref<16x32xf32, #tpu.memory_space<vmem>>, vector<16x32xf32>
    %c0_1 = arith.constant 0 : index
    %c0_2 = arith.constant 0 : index
    %1 = vector.load %arg2[%c0_1, %c0_2] : memref<128x32xf32, #tpu.memory_space<vmem>>, vector<128x32xf32>
    %cst = arith.constant dense<0.000000e+00> : vector<16x128xf32>
    %2 = tpu.matmul %0, %1, %cst {dimension_numbers = #tpu.dot_dimension_numbers<[1], [1], [0], [0], [0, 0, 1, 0], [], []>} : vector<16x32xf32>, vector<128x32xf32>, vector<16x128xf32> -> vector<16x128xf32>
    %c0_3 = arith.constant 0 : index
    %c0_4 = arith.constant 0 : index
    %3 = vector.load %arg3[%c0_3, %c0_4] : memref<1x128xf32, #tpu.memory_space<vmem>>, vector<1x128xf32>
    %4 = vector.broadcast %3 : vector<1x128xf32> to vector<16x128xf32>
    %5 = arith.addf %2, %4 : vector<16x128xf32>
    %cst_5 = arith.constant 0.000000e+00 : f32
    %6 = vector.broadcast %cst_5 : f32 to vector<16x128xf32>
    %7 = arith.cmpf ogt, %5, %6 : vector<16x128xf32>
    %cst_6 = arith.constant 0.00999999977 : f32
    %8 = vector.broadcast %cst_6 : f32 to vector<16x128xf32>
    %9 = arith.mulf %8, %5 : vector<16x128xf32>
    %10 = arith.select %7, %5, %9 : vector<16x128xi1>, vector<16x128xf32>
    %c0_7 = arith.constant 0 : index
    %c0_8 = arith.constant 0 : index
    %11 = vector.load %arg4[%c0_7, %c0_8] : memref<16x1xf32, #tpu.memory_space<vmem>>, vector<16x1xf32>
    %12 = vector.broadcast %11 : vector<16x1xf32> to vector<16x128xf32>
    %13 = arith.mulf %10, %12 : vector<16x128xf32>
    %c0_9 = arith.constant 0 : index
    %c0_10 = arith.constant 0 : index
    %14 = vector.load %arg5[%c0_9, %c0_10] : memref<16x128xf32, #tpu.memory_space<vmem>>, vector<16x128xf32>
    tpu.vector_store %arg5[%c0_9, %c0_10], %13 {strides = array<i32>} : memref<16x128xf32, #tpu.memory_space<vmem>>, vector<16x128xf32>,
    return
  }
  func.func @transform_0(%arg0: i32) -> (i32, i32) {
    %c0_i32 = arith.constant 0 : i32
    %c0_i32_0 = arith.constant 0 : i32
    return %arg0, %c0_i32 : i32, i32
  }
  func.func @transform_1(%arg0: i32) -> (i32, i32) {
    %c0_i32 = arith.constant 0 : i32
    %c0_i32_0 = arith.constant 0 : i32
    %c0_i32_1 = arith.constant 0 : i32
    return %c0_i32, %c0_i32_0 : i32, i32
  }
  func.func @transform_2(%arg0: i32) -> (i32, i32) {
    %c0_i32 = arith.constant 0 : i32
    %c0_i32_0 = arith.constant 0 : i32
    %c0_i32_1 = arith.constant 0 : i32
    return %c0_i32, %c0_i32_0 : i32, i32
  }
  func.func @transform_3(%arg0: i32) -> (i32, i32) {
    %c0_i32 = arith.constant 0 : i32
    %c0_i32_0 = arith.constant 0 : i32
    return %arg0, %c0_i32 : i32, i32
  }
  func.func @transform_4(%arg0: i32) -> (i32, i32) {
    %c0_i32 = arith.constant 0 : i32
    %c0_i32_0 = arith.constant 0 : i32
    return %arg0, %c0_i32 : i32, i32
  }
}

</mosaic_0001>

<bundles_post_ra>
// kernel: tpu_custom_call.1
= control target key start
LH: loop header
LB: loop body
LE: loop exit
PB: predicated region body
PF: predicated region fallthrough
CT: control target
= control target key end

     0   :  { %vm40_vm0 = vcmask 261120   ;;  %s353_s0 = inlined_call_operand.vmem [shape: f32[16,32], index: 0, kind: input, shape index: {}]   ;;  %s354_s1 = inlined_call_operand.vmem [shape: f32[128,32], index: 1, kind: input, shape index: {}]   ;;  %s355_s2 = inlined_call_operand.vmem [shape: f32[1,128], index: 2, kind: input, shape index: {}]   ;;  %s356_s3 = inlined_call_operand.vmem [shape: f32[16,1], index: 3, kind: input, shape index: {}]   ;;  %s357_s4 = inlined_call_operand.hbm [shape: f32[16,128], index: 4, kind: output, shape index: {}]  }
   0x1   :  { %v35_v0 = vld [vmem:[%s354_s1 + $0x78] sm:$0xff]  ;;  %v34_v1 = vld [vmem:[%s354_s1 + $0x70] sm:$0xff] }
   0x2   :  { %158 = vmatpush.xpose.msk.msra.mxu0 %vm40_vm0, %v35_v0  ;;  %176 = vmatpush.xpose.msk.msra.mxu1 %vm40_vm0, %v35_v0 }
   0x3   :  { %9 = vsyncpa [#allocation3], 0  ;;  %v33_v2 = vld [vmem:[%s354_s1 + $0x68] sm:$0xff]  ;;  %v32_v3 = vld [vmem:[%s354_s1 + $0x60] sm:$0xff]  ;;  %v224_v10 = vmov 0   ;;  %s146_s7 = sshll.u32 %s357_s4, 4  ;;  %s147_s7 = int_to_ptr.hbm [resolvable:$true] %s146_s7 }
   0x4   :  { %v31_v4 = vld [vmem:[%s354_s1 + $0x58] sm:$0xff]  ;;  %v30_v5 = vld [vmem:[%s354_s1 + $0x50] sm:$0xff]  ;;  %v29_v6 = vld [vmem:[%s354_s1 + $0x48] sm:$0xff]  ;;  %196 = vset.pattern.permute.xlu0 %v224_v10 }
   0x5   :  { %v28_v7 = vld [vmem:[%s354_s1 + $0x40] sm:$0xff]  ;;  %v27_v9 = vld [vmem:[%s354_s1 + $0x38] sm:$0xff]  ;;  %v26_v11 = vld [vmem:[%s354_s1 + $0x30] sm:$0xff] }
   0x6   :  { %159 = vmatpush.xpose.msk.msra.mxu0 %vm40_vm0, %v34_v1  ;;  %177 = vmatpush.xpose.msk.msra.mxu1 %vm40_vm0, %v34_v1  ;;  %v124_v8 = vld [vmem:[%s356_s3] sm:$0xff]  ;;  %v125_v12 = vld [vmem:[%s356_s3 + $0x8] sm:$0xff]  ;;  %v23_v15 = vld [vmem:[%s354_s1 + $0x18] sm:$0xff] }
   0x7   :  { %128 = vperm.xlu0 %196, %v124_v8   ;;  %v25_v13 = vld [vmem:[%s354_s1 + $0x28] sm:$0xff]  ;;  %v24_v14 = vld [vmem:[%s354_s1 + $0x20] sm:$0xff]  ;;  %v22_v16 = vld [vmem:[%s354_s1 + $0x10] sm:$0xff] }
   0x8   :  { %v21_v17 = vld [vmem:[%s354_s1 + $0x8] sm:$0xff]  ;;  %v20_v18 = vld [vmem:[%s354_s1] sm:$0xff]  ;;  %s225_s1 = smov [#allocation2]  }
   0x9   :  { %v18_v19 = vld [vmem:[%s353_s0] sm:$0xff]  ;;  %v19_v20 = vld [vmem:[%s353_s0 + $0x8] sm:$0xff]  ;;  %s144_s30 = sshll.u32 %s225_s1, 4  ;;  %s226_s0 = smov 128   ;;  %s145_s30 = int_to_ptr.vmem [resolvable:$true] %s144_s30 }
   0xa   :  { %160 = vmatpush.xpose.msk.msra.mxu0 %vm40_vm0, %v33_v2  ;;  %178 = vmatpush.xpose.msk.msra.mxu1 %vm40_vm0, %v33_v2  ;;  %v197_v22 = vld [vmem:[%s355_s2] ss:$0 sm:$0xff]  ;;  %s227_s2 = smov 8  }
   0xe   :  { %161 = vmatpush.xpose.msk.msra.mxu0 %vm40_vm0, %v32_v3  ;;  %179 = vmatpush.xpose.msk.msra.mxu1 %vm40_vm0, %v32_v3 }
   0xf   :  { %133 = vperm.xlu0 %196, %v125_v12  }
  0x12   :  { %162 = vmatpush.xpose.msk.msra.mxu0 %vm40_vm0, %v31_v4  ;;  %180 = vmatpush.xpose.msk.msra.mxu1 %vm40_vm0, %v31_v4 }
  0x16   :  { %163 = vmatpush.xpose.msk.msra.mxu0 %vm40_vm0, %v30_v5  ;;  %181 = vmatpush.xpose.msk.msra.mxu1 %vm40_vm0, %v30_v5 }
  0x1a   :  { %164 = vmatpush.xpose.msk.msra.mxu0 %vm40_vm0, %v29_v6  ;;  %182 = vmatpush.xpose.msk.msra.mxu1 %vm40_vm0, %v29_v6 }
  0x1e   :  { %165 = vmatpush.xpose.msk.msra.mxu0 %vm40_vm0, %v28_v7  ;;  %183 = vmatpush.xpose.msk.msra.mxu1 %vm40_vm0, %v28_v7 }
  0x22   :  { %166 = vmatpush.xpose.msk.msra.mxu0 %vm40_vm0, %v27_v9  ;;  %184 = vmatpush.xpose.msk.msra.mxu1 %vm40_vm0, %v27_v9 }
  0x26   :  { %167 = vmatpush.xpose.msk.msra.mxu0 %vm40_vm0, %v26_v11  ;;  %185 = vmatpush.xpose.msk.msra.mxu1 %vm40_vm0, %v26_v11 }
  0x2a   :  { %168 = vmatpush.xpose.msk.msra.mxu0 %vm40_vm0, %v25_v13  ;;  %186 = vmatpush.xpose.msk.msra.mxu1 %vm40_vm0, %v25_v13 }
  0x2e   :  { %169 = vmatpush.xpose.msk.msra.mxu0 %vm40_vm0, %v24_v14  ;;  %187 = vmatpush.xpose.msk.msra.mxu1 %vm40_vm0, %v24_v14 }
  0x32   :  { %170 = vmatpush.xpose.msk.msra.mxu0 %vm40_vm0, %v23_v15  ;;  %188 = vmatpush.xpose.msk.msra.mxu1 %vm40_vm0, %v23_v15 }
  0x36   :  { %171 = vmatpush.xpose.msk.msra.mxu0 %vm40_vm0, %v22_v16  ;;  %189 = vmatpush.xpose.msk.msra.mxu1 %vm40_vm0, %v22_v16 }
  0x3a   :  { %172 = vmatpush.xpose.msk.msra.mxu0 %vm40_vm0, %v21_v17  ;;  %190 = vmatpush.xpose.msk.msra.mxu1 %vm40_vm0, %v21_v17 }
  0x3e   :  { %173 = vmatpush.xpose.msk.msra.mxu0 %vm40_vm0, %v20_v18  ;;  %191 = vmatpush.xpose.msk.msra.mxu1 %vm40_vm0, %v20_v18 }
  0x41   :  { %174 = vmatmul.msk.f32.vlgmr.msra.gmra.mxu0 %vm40_vm0, %v18_v19  ;;  %175 = vmatmul.msk.f32.vlgmr.msra.gmra.mxu1 %vm40_vm0, %v19_v20 }
  0x79   :  { %v129_v21 = vpop.permute.xlu0 %128 }
  0x81   :  { %v134_v29 = vpop.permute.xlu0 %133 }
  0xbe   :  { %v112_v23 = vpop.f32.mrf.mxu0  ;;  %v115_v24 = vpop.f32.mrf.mxu1 }
  0xbf   :  { %v113_v25 = vadd.f32 %v197_v22, %v112_v23  ;;  %v116_v26 = vadd.f32 %v197_v22, %v115_v24 }
  0xc1   :  { %vm118_vm1 = vcmp.gt.f32.partialorder %v113_v25, 0.0  ;;  %v120_v27 = vmul.f32 0.01, %v113_v25  ;;  %vm119_vm2 = vcmp.gt.f32.partialorder %v116_v26, 0.0  ;;  %v121_v28 = vmul.f32 0.01, %v116_v26 }
  0xc3   :  { %v122_v30 = vsel %vm118_vm1, %v113_v25, %v120_v27  ;;  %v123_v31 = vsel %vm119_vm2, %v116_v26, %v121_v28 }
  0xc4   :  { %v136_v32 = vmul.f32 %v129_v21, %v122_v30  ;;  %v137_v33 = vmul.f32 %v134_v29, %v123_v31 }
  0xc6   :  { %138 = vst [vmem:[#allocation2] sm:$0xff] %v136_v32 }
  0xc7   :  { %139 = vst [vmem:[#allocation2 + $0x8] sm:$0xff] %v137_v33 }
  0xc8   :  { %152 = dma.vmem_to_hbm [thread:$0]  %s145_s30, 256, %s147_s7, [#allocation3], %s226_s0, %s226_s0, %s227_s2  }
  0xc9   :  { %222 = dma.done.wait [#allocation3], 256  }
  0xca   :  { %223 = vsyncadd [#allocation3], 4294967040 }
  0xcb   :  { %157 = vsyncpa [#allocation3], 1 }

</bundles_post_ra>
